<compile_context>
chip_gen: v6e
topology: v6e:2x2x1
jax: 0.10.0
libtpu: 0.0.40
codegen_flags: <defaults>
</compile_context>

<pallas_src>
import numpy as np
import jax
import jax.numpy as jnp
from jax import lax
from jax.experimental import pallas as pl
from jax.experimental.pallas import tpu as pltpu

_TILE_TARGET_BYTES = 4 << 20      # ~4 MiB per plane per pipeline buffer
_VMEM_LIMIT_BYTES = 48 << 20      # explicit scoped-VMEM limit (safe on v5e/v6e/v7x)
_SMALL_PLANE_BYTES = 1 << 20      # below this, a single full-dim block is fine


def _make_separable_kernel(ap2):
    # ap2 is a Python float -> lowered as a literal (no captured array constant).
    def kernel(ux2_ref, uy2_ref, xr_ref, xi_ref, or_ref, oi_ref):
        # Separable radius^2: (rows, 1) + (1, lanes) broadcast -> (rows, lanes).
        ur2 = uy2_ref[...] + ux2_ref[...]
        inside = ur2 <= ap2
        # Pupil is real (zero phase) -> pure select on both planes.
        or_ref[...] = jnp.where(inside, xr_ref[...], 0.0)
        oi_ref[...] = jnp.where(inside, xi_ref[...], 0.0)
    return kernel


def _mask_mul_kernel(m_ref, xr_ref, xi_ref, or_ref, oi_ref):
    m = m_ref[...]
    or_ref[...] = m * xr_ref[...]
    oi_ref[...] = m * xi_ref[...]


def _pick_tile_rows(rows, lanes):
    """Row-tile size: multiple of 8 (or full), ~4 MiB per plane, >=4 grid steps
    for anything bigger than ~1 MiB so pipelining / both TCs engage."""
    bytes_per_row = lanes * 4
    plane_bytes = rows * bytes_per_row
    if plane_bytes <= _SMALL_PLANE_BYTES or rows <= 8:
        return rows
    budget_rows = max(8, ((_TILE_TARGET_BYTES // bytes_per_row) // 8) * 8)
    steps_rows = max(8, ((rows // 4) // 8) * 8)     # aim for >= 4 grid steps
    return min(budget_rows, steps_rows, rows)


def _fold_factor(n, lane_w):
    """Smallest k dividing n with (k*lane_w) % 128 == 0 (prefer k*lane_w >= 512)."""
    best = None
    for k in range(1, n + 1):
        if n % k or (k * lane_w) % 128:
            continue
        if best is None:
            best = k
        if k * lane_w >= 512:
            return k
    return best if best is not None else n


def _u_vec(computation_size, N_pts, umax):
    step_f = computation_size / N_pts
    return np.arange(-umax, umax, step_f, dtype=np.float32)


def scalar_window_forward_planar(xr, xi, *, aperture_size=1.0, computation_size=4.0,
                                 N_pts=128, umax=1.0):
    """Planar (real, imag) float32 entry point.  xr, xi: (n, n, *trailing) float32.

    Keeping the pipeline planar avoids the complex split/recombine HBM passes.
    """
    u_vec = _u_vec(computation_size, N_pts, umax)   # match torch.arange length
    n = int(u_vec.shape[0])
    assert xr.shape == xi.shape
    assert xr.shape[0] == n and xr.shape[1] == n, (
        f"expected leading spatial dims ({n},{n}), got {xr.shape[:2]}")

    orig_shape = xr.shape
    cz = 1
    for d in orig_shape[2:]:
        cz *= int(d)
    lane_w = n * cz

    u2 = u_vec.astype(np.float32) ** 2
    ap2_f32 = np.float32(float(aperture_size) ** 2)

    xr2 = xr.reshape(n, lane_w).astype(jnp.float32)
    xi2 = xi.reshape(n, lane_w).astype(jnp.float32)

    cparams = pltpu.CompilerParams(dimension_semantics=("parallel",),
                                   vmem_limit_bytes=_VMEM_LIMIT_BYTES)

    if lane_w % 128 == 0:
        # --- Lane-dense separable-factor path (mask never touches HBM as a plane).
        rows, lanes = n, lane_w
        tile_rows = _pick_tile_rows(rows, lanes)
        grid = (pl.cdiv(rows, tile_rows),)

        ux2 = jnp.asarray(np.repeat(u2, cz).reshape(1, lanes))   # lane (column) factor
        uy2 = jnp.asarray(u2.reshape(rows, 1))                   # sublane (row) factor

        data_spec = pl.BlockSpec((tile_rows, lanes), lambda r: (r, 0))
        row_spec = pl.BlockSpec((tile_rows, 1), lambda r: (r, 0))
        col_spec = pl.BlockSpec((1, lanes), lambda r: (0, 0))

        yr, yi = pl.pallas_call(
            _make_separable_kernel(float(ap2_f32)),
            out_shape=(jax.ShapeDtypeStruct((rows, lanes), jnp.float32),
                       jax.ShapeDtypeStruct((rows, lanes), jnp.float32)),
            grid=grid,
            in_specs=[col_spec, row_spec, data_spec, data_spec],
            out_specs=(data_spec, data_spec),
            compiler_params=cparams,
            cost_estimate=pl.CostEstimate(flops=3 * rows * lanes,
                                          transcendentals=0,
                                          bytes_accessed=4 * rows * lanes * 4),
        )(ux2, uy2, xr2, xi2)
    else:
        # --- Fold rows into the lane axis for lane-dense stores; stream a
        #     precomputed full pupil mask in the same folded layout.
        k = _fold_factor(n, lane_w)
        rows, lanes = n // k, k * lane_w
        tile_rows = _pick_tile_rows(rows, lanes)
        grid = (pl.cdiv(rows, tile_rows),)

        ur2 = u2[:, None] + u2[None, :]                       # (n, n) f32
        mask = (ur2 <= ap2_f32).astype(np.float32)            # (n, n)
        mask = np.repeat(mask, cz, axis=1)                    # (n, n*cz)
        mask_f = jnp.asarray(mask.reshape(rows, lanes))

        xr_f = xr2.reshape(rows, lanes)
        xi_f = xi2.reshape(rows, lanes)

        data_spec = pl.BlockSpec((tile_rows, lanes), lambda r: (r, 0))

        yr, yi = pl.pallas_call(
            _mask_mul_kernel,
            out_shape=(jax.ShapeDtypeStruct((rows, lanes), jnp.float32),
                       jax.ShapeDtypeStruct((rows, lanes), jnp.float32)),
            grid=grid,
            in_specs=[data_spec, data_spec, data_spec],
            out_specs=(data_spec, data_spec),
            compiler_params=cparams,
            cost_estimate=pl.CostEstimate(flops=2 * rows * lanes,
                                          transcendentals=0,
                                          bytes_accessed=5 * rows * lanes * 4),
        )(mask_f, xr_f, xi_f)

    return yr.reshape(orig_shape), yi.reshape(orig_shape)


def scalar_window_forward(x, *, aperture_size=1.0, computation_size=4.0,
                          N_pts=128, umax=1.0):
    """Complex64 wrapper matching torchScalarWindow.forward(input)."""
    # TODO(synk): one fused real/imag split and one lax.complex recombine pass
    # remain at this boundary; use scalar_window_forward_planar inside a larger
    # pipeline to avoid them.
    xr = jnp.real(x)
    xi = jnp.imag(x)
    yr, yi = scalar_window_forward_planar(
        xr, xi, aperture_size=aperture_size, computation_size=computation_size,
        N_pts=N_pts, umax=umax)
    return lax.complex(yr, yi).reshape(x.shape)


def _reference_forward(x, *, aperture_size, computation_size, N_pts, umax=1.0):
    step_f = computation_size / N_pts
    u_vec = np.arange(-umax, umax, step_f, dtype=np.float32)
    ux, uy = np.meshgrid(u_vec, u_vec, indexing="xy")
    uy = -uy
    ur2 = ux ** 2 + uy ** 2
    pupil = (ur2 <= np.float32(float(aperture_size) ** 2)).astype(np.complex64)
    return pupil[..., None, None] * np.asarray(x)


if __name__ == "__main__":
    aperture_size = 1.0
    computation_size = 4.0
    N_pts = 32                      # small shapes: grid n = 16
    umax = 1.0
    n = len(_u_vec(computation_size, N_pts, umax))   # 16

    key = jax.random.PRNGKey(0)
    k1, k2, k3, k4 = jax.random.split(key, 4)

    # Test 1: lane-dense trailing dims -> separable-factor path (lane_w = 128).
    C, Z = 2, 4
    x1 = (jax.random.normal(k1, (n, n, C, Z), dtype=jnp.float32)
          + 1j * jax.random.normal(k2, (n, n, C, Z), dtype=jnp.float32)
          ).astype(jnp.complex64)
    y1 = jax.block_until_ready(scalar_window_forward(
        x1, aperture_size=aperture_size, computation_size=computation_size,
        N_pts=N_pts, umax=umax))
    y1_ref = _reference_forward(np.asarray(x1), aperture_size=aperture_size,
                                computation_size=computation_size, N_pts=N_pts,
                                umax=umax)
    np.testing.assert_allclose(np.asarray(y1), y1_ref, rtol=1e-5, atol=1e-5)

    # Test 2: size-1 trailing dims -> row-folded full-mask path (lane_w = 16).
    x2 = (jax.random.normal(k3, (n, n, 1, 1), dtype=jnp.float32)
          + 1j * jax.random.normal(k4, (n, n, 1, 1), dtype=jnp.float32)
          ).astype(jnp.complex64)
    y2 = jax.block_until_ready(scalar_window_forward(
        x2, aperture_size=aperture_size, computation_size=computation_size,
        N_pts=N_pts, umax=umax))
    y2_ref = _reference_forward(np.asarray(x2), aperture_size=aperture_size,
                                computation_size=computation_size, N_pts=N_pts,
                                umax=umax)
    np.testing.assert_allclose(np.asarray(y2), y2_ref, rtol=1e-5, atol=1e-5)

    print("KERNEL_OK")
</pallas_src>

<mosaic_0001>
module attributes {stable_mosaic.version = 11 : i64} {
  func.func @kernel(%arg0: i32, %arg1: memref<1x128xf32, #tpu.memory_space<vmem>>, %arg2: memref<16x1xf32, #tpu.memory_space<vmem>>, %arg3: memref<16x128xf32, #tpu.memory_space<vmem>>, %arg4: memref<16x128xf32, #tpu.memory_space<vmem>>, %arg5: memref<16x128xf32, #tpu.memory_space<vmem>>, %arg6: memref<16x128xf32, #tpu.memory_space<vmem>>) attributes {dimension_semantics = [#tpu.dimension_semantics<parallel>], iteration_bounds = array<i64: 1>, scalar_prefetch = 0 : i64, scratch_operands = 0 : i64, tpu.core_type = #tpu.core_type<tc>, window_params = [{pipeline_mode = #tpu.pipeline_mode<synchronous>, transform_indices = @transform_0, window_bounds = array<i64: 1, 128>}, {transform_indices = @transform_1, window_bounds = array<i64: 16, 1>}, {transform_indices = @transform_2, window_bounds = array<i64: 16, 128>}, {transform_indices = @transform_3, window_bounds = array<i64: 16, 128>}, {transform_indices = @transform_4, window_bounds = array<i64: 16, 128>}, {transform_indices = @transform_5, window_bounds = array<i64: 16, 128>}]} {
    %c0 = arith.constant 0 : index
    %c0_0 = arith.constant 0 : index
    %0 = vector.load %arg2[%c0, %c0_0] : memref<16x1xf32, #tpu.memory_space<vmem>>, vector<16x1xf32>
    %c0_1 = arith.constant 0 : index
    %c0_2 = arith.constant 0 : index
    %1 = vector.load %arg1[%c0_1, %c0_2] : memref<1x128xf32, #tpu.memory_space<vmem>>, vector<1x128xf32>
    %2 = vector.broadcast %0 : vector<16x1xf32> to vector<16x128xf32>
    %3 = vector.broadcast %1 : vector<1x128xf32> to vector<16x128xf32>
    %4 = arith.addf %2, %3 : vector<16x128xf32>
    %cst = arith.constant 1.000000e+00 : f32
    %5 = vector.broadcast %cst : f32 to vector<16x128xf32>
    %6 = arith.cmpf ole, %4, %5 : vector<16x128xf32>
    %c0_3 = arith.constant 0 : index
    %c0_4 = arith.constant 0 : index
    %7 = vector.load %arg3[%c0_3, %c0_4] : memref<16x128xf32, #tpu.memory_space<vmem>>, vector<16x128xf32>
    %cst_5 = arith.constant 0.000000e+00 : f32
    %8 = vector.broadcast %cst_5 : f32 to vector<16x128xf32>
    %9 = arith.select %6, %7, %8 : vector<16x128xi1>, vector<16x128xf32>
    %c0_6 = arith.constant 0 : index
    %c0_7 = arith.constant 0 : index
    %10 = vector.load %arg5[%c0_6, %c0_7] : memref<16x128xf32, #tpu.memory_space<vmem>>, vector<16x128xf32>
    tpu.vector_store %arg5[%c0_6, %c0_7], %9 {strides = array<i32>} : memref<16x128xf32, #tpu.memory_space<vmem>>, vector<16x128xf32>,
    %c0_8 = arith.constant 0 : index
    %c0_9 = arith.constant 0 : index
    %11 = vector.load %arg4[%c0_8, %c0_9] : memref<16x128xf32, #tpu.memory_space<vmem>>, vector<16x128xf32>
    %cst_10 = arith.constant 0.000000e+00 : f32
    %12 = vector.broadcast %cst_10 : f32 to vector<16x128xf32>
    %13 = arith.select %6, %11, %12 : vector<16x128xi1>, vector<16x128xf32>
    %c0_11 = arith.constant 0 : index
    %c0_12 = arith.constant 0 : index
    %14 = vector.load %arg6[%c0_11, %c0_12] : memref<16x128xf32, #tpu.memory_space<vmem>>, vector<16x128xf32>
    tpu.vector_store %arg6[%c0_11, %c0_12], %13 {strides = array<i32>} : memref<16x128xf32, #tpu.memory_space<vmem>>, vector<16x128xf32>,
    return
  }
  func.func @transform_0(%arg0: i32) -> (i32, i32) {
    %c0_i32 = arith.constant 0 : i32
    %c0_i32_0 = arith.constant 0 : i32
    %c0_i32_1 = arith.constant 0 : i32
    return %c0_i32, %c0_i32_0 : i32, i32
  }
  func.func @transform_1(%arg0: i32) -> (i32, i32) {
    %c0_i32 = arith.constant 0 : i32
    %c0_i32_0 = arith.constant 0 : i32
    return %arg0, %c0_i32 : i32, i32
  }
  func.func @transform_2(%arg0: i32) -> (i32, i32) {
    %c0_i32 = arith.constant 0 : i32
    %c0_i32_0 = arith.constant 0 : i32
    return %arg0, %c0_i32 : i32, i32
  }
  func.func @transform_3(%arg0: i32) -> (i32, i32) {
    %c0_i32 = arith.constant 0 : i32
    %c0_i32_0 = arith.constant 0 : i32
    return %arg0, %c0_i32 : i32, i32
  }
  func.func @transform_4(%arg0: i32) -> (i32, i32) {
    %c0_i32 = arith.constant 0 : i32
    %c0_i32_0 = arith.constant 0 : i32
    return %arg0, %c0_i32 : i32, i32
  }
  func.func @transform_5(%arg0: i32) -> (i32, i32) {
    %c0_i32 = arith.constant 0 : i32
    %c0_i32_0 = arith.constant 0 : i32
    return %arg0, %c0_i32 : i32, i32
  }
}

</mosaic_0001>

<bundles_post_ra>
// kernel: tpu_custom_call.1
= control target key start
LH: loop header
LB: loop body
LE: loop exit
PB: predicated region body
PF: predicated region fallthrough
CT: control target
= control target key end

     0   :  { %11 = vsyncpa [#allocation3], 0  ;;  %s246_s0 = inlined_call_operand.vmem [shape: f32[1,128], index: 0, kind: input, shape index: {}]   ;;  %s247_s1 = inlined_call_operand.vmem [shape: f32[16,1], index: 1, kind: input, shape index: {}]   ;;  %s248_s2 = inlined_call_operand.vmem [shape: f32[16,128], index: 2, kind: input, shape index: {}]   ;;  %s249_s3 = inlined_call_operand.hbm [shape: f32[16,128], index: 3, kind: input, shape index: {}]   ;;  %s250_s4 = inlined_call_operand.hbm [shape: f32[16,128], index: 4, kind: output, shape index: {0}]   ;;  %s251_s5 = inlined_call_operand.hbm [shape: f32[16,128], index: 5, kind: output, shape index: {1}]  }
   0x1   :  { %12 = vsyncpa [#allocation4], 0 }
   0x2   :  { %13 = vsyncpa [#allocation7], 0  ;;  %s177_s18 = smov [#allocation2]  }
   0x3   :  { %s25_s19 = sshll.u32 %s177_s18, 4  ;;  %s26_s19 = int_to_ptr.vmem [resolvable:$true] %s25_s19 }
   0x4   :  { %s119_s20 = scalar_lea.vmem %s26_s19, 256  ;;  %p124_p1 = scmp.lt.s32.totalorder %s26_s19, %s26_s19 }
   0x5   :  { %p120_p0 = scmp.ne.s32.totalorder %s26_s19, %s119_s20  ;;  %p125_p2 = scmp.lt.s32.totalorder %s119_s20, %s119_s20 }
   0x7   :  { %p126_p3 = por %p125_p2, %p124_p1 }
   0x9   :  { %p127_p4 = pnand %p126_p3, %p120_p0 }
   0xb   :  { %130 = shalt.err (!%p127_p4)
}
   0xc   :  { %s178_s21 = smov 128   ;;  %s179_s22 = smov 8  }
   0xd   :  { %31 = dma.hbm_to_vmem [thread:$0]  %s249_s3, 256, %s26_s19, [#allocation3], %s178_s21, %s178_s21, %s179_s22  }
   0xe   :  { %171 = dma.done.wait [#allocation3], 256  }
   0xf   :  { %172 = vsyncadd [#allocation3], 4294967040  ;;  %v180_v0 = vmov 0   ;;  %v35_v1 = vld [vmem:[%s247_s1] sm:$0xff]  ;;  %v36_v2 = vld [vmem:[%s247_s1 + $0x8] sm:$0xff]  ;;  %s181_s7 = smov [#allocation5]  }
  0x10   :  { %110 = vset.pattern.permute.xlu0 %v180_v0  ;;  %v103_v3 = vld [vmem:[%s246_s0] ss:$0 sm:$0xff]  ;;  %s75_s8 = sshll.u32 %s181_s7, 4  ;;  %v59_v11 = vld [vmem:[%s248_s2 + $0x8] sm:$0xff]  ;;  %s182_s0 = smov [#allocation6]   ;;  %s76_s8 = int_to_ptr.vmem [resolvable:$true] %s75_s8 }
  0x11   :  { %40 = vperm.xlu0 %110, %v35_v1   ;;  %v58_v5 = vld [vmem:[%s248_s2] sm:$0xff]  ;;  %v65_v12 = vld [vmem:[#allocation2 + $0x8] sm:$0xff]  ;;  %s87_s10 = sshll.u32 %s182_s0, 4  ;;  %s131_s11 = scalar_lea.vmem %s76_s8, 256  ;;  %s88_s10 = int_to_ptr.vmem [resolvable:$true] %s87_s10 }
  0x12   :  { %v64_v6 = vld [vmem:[#allocation2] sm:$0xff]  ;;  %p132_p5 = scmp.ne.s32.totalorder %s76_s8, %s131_s11  ;;  %p136_p6 = scmp.lt.s32.totalorder %s76_s8, %s76_s8 }
  0x13   :  { %p137_p7 = scmp.lt.s32.totalorder %s131_s11, %s131_s11 }
  0x15   :  { %45 = vperm.xlu0 %110, %v36_v2   ;;  %p138_p8 = por %p137_p7, %p136_p6 }
  0x17   :  { %p139_p9 = pnand %p138_p8, %p132_p5 }
  0x8c   :  { %v41_v4 = vpop.permute.xlu0 %40 }
  0x8d   :  { %v54_v7 = vadd.f32 %v103_v3, %v41_v4 }
  0x8f   :  { %vm56_vm0 = vcmp.le.f32.partialorder %v54_v7, 1.0 }
  0x90   :  { %v60_v8 = vsel %vm56_vm0, %v58_v5, 0.0  ;;  %v66_v9 = vsel %vm56_vm0, %v64_v6, 0.0  ;;  %v46_v10 = vpop.permute.xlu0 %45 }
  0x91   :  { %62 = vst [vmem:[#allocation5] sm:$0xff] %v60_v8  ;;  %68 = vst [vmem:[#allocation6] sm:$0xff] %v66_v9  ;;  %v55_v13 = vadd.f32 %v103_v3, %v46_v10 }
  0x93   :  { %vm57_vm1 = vcmp.le.f32.partialorder %v55_v13, 1.0 }
  0x94   :  { %v61_v14 = vsel %vm57_vm1, %v59_v11, 0.0  ;;  %v67_v15 = vsel %vm57_vm1, %v65_v12, 0.0 }
  0x95   :  { %63 = vst [vmem:[#allocation5 + $0x8] sm:$0xff] %v61_v14  ;;  %69 = vst [vmem:[#allocation6 + $0x8] sm:$0xff] %v67_v15 }
  0x96   :  { %142 = shalt.err (!%p139_p9)
}
  0x97   :  { %81 = dma.vmem_to_hbm [thread:$0]  %s76_s8, 256, %s250_s4, [#allocation4], %s178_s21, %s178_s21, %s179_s22  }
  0x98   :  { %s151_s13 = scalar_lea.vmem %s88_s10, 256  ;;  %p156_p11 = scmp.lt.s32.totalorder %s88_s10, %s88_s10 }
  0x99   :  { %p152_p10 = scmp.ne.s32.totalorder %s88_s10, %s151_s13  ;;  %p157_p12 = scmp.lt.s32.totalorder %s151_s13, %s151_s13 }
  0x9b   :  { %p158_p13 = por %p157_p12, %p156_p11 }
  0x9d   :  { %p159_p0 = pnand %p158_p13, %p152_p10 }
  0x9f   :  { %162 = shalt.err (!%p159_p0)
}
  0xa0   :  { %93 = dma.vmem_to_hbm [thread:$0]  %s88_s10, 256, %s251_s5, [#allocation7], %s178_s21, %s178_s21, %s179_s22  }
  0xa1   :  { %173 = dma.done.wait [#allocation4], 256  }
  0xa2   :  { %174 = vsyncadd [#allocation4], 4294967040 }
  0xa3   :  { %175 = dma.done.wait [#allocation7], 256  }
  0xa4   :  { %176 = vsyncadd [#allocation7], 4294967040 }
  0xa5   :  { %100 = vsyncpa [#allocation3], 1 }
  0xa6   :  { %101 = vsyncpa [#allocation4], 1 }
  0xa7   :  { %102 = vsyncpa [#allocation7], 1 }

</bundles_post_ra>
